<compile_context>
chip_gen: v7x
topology: tpu7x:2x2x1
jax: 0.10.0
libtpu: 0.0.40
codegen_flags: <defaults>
</compile_context>

<pallas_src>
import functools

import jax
import jax.numpy as jnp
from jax.experimental import pallas as pl
from jax.experimental.pallas import tpu as pltpu

BN_EPS = 1e-5
FUSED_MAX_N = 1024                      # n_pad up to this -> single fused kernel
LARGE_TILE = 512                        # A_hat tile edge for the tiled path
RESIDENT_FEAT_BYTES = 24 * 1024 * 1024  # budget (incl. double buffer) for resident feat


def _round_up(x, m):
    return (x + m - 1) // m * m


def _pad2(x, rows, cols):
    return jnp.pad(x, ((0, rows - x.shape[0]), (0, cols - x.shape[1])))


def _vmem_limit_bytes():
    # ~75% of physical VMEM: ~48 MiB on v7x (64 MiB phys), ~96 MiB on v5e/v6e.
    try:
        cap = pltpu.get_tpu_info().vmem_capacity_bytes
    except Exception:
        cap = 64 * 1024 * 1024
    return int(min(cap * 3 // 4, 100 * 1024 * 1024))


# ----------------------------------------------------------------------------
# Fused small-N kernel: both GCN layers in one launch, everything VMEM-resident.
#   out = ((A @ relu_bn(A @ X @ W1 + b1)) @ W2 + b2) / T
# ----------------------------------------------------------------------------
def odin_fused_kernel(a_ref, x_ref, w1_ref, b1_ref, s1_ref, t1_ref,
                      w2_ref, b2_ref, s2_ref, out_ref):
    a = a_ref[...]                                                     # bf16
    # Layer 1: aggregate-then-transform  (A @ X) @ W1
    agg1 = jnp.dot(a, x_ref[...], preferred_element_type=jnp.float32)
    h = jnp.dot(agg1, w1_ref[...], preferred_element_type=jnp.float32) + b1_ref[...]
    h = jnp.maximum(h, 0.0)
    h = h * s1_ref[...] + t1_ref[...]          # folded BatchNorm (running stats)
    # dropout: eval mode -> identity
    # Layer 2
    agg2 = jnp.dot(a, h.astype(jnp.bfloat16), preferred_element_type=jnp.float32)
    o = jnp.dot(agg2, w2_ref[...], preferred_element_type=jnp.float32) + b2_ref[...]
    out_ref[...] = (o * s2_ref[...]).astype(out_ref.dtype)             # folded 1/T


def _odin_fused(a, x, w1, b1, s1, t1, w2, b2, s2, *, n_pad, fp, hp, cp):
    flops = (2 * n_pad * n_pad * fp + 2 * n_pad * fp * hp
             + 2 * n_pad * n_pad * hp + 2 * n_pad * hp * cp)
    bytes_accessed = sum(v.size * v.dtype.itemsize
                         for v in (a, x, w1, w2)) + n_pad * cp * 4
    full = lambda r, c: pl.BlockSpec((r, c), lambda i: (0, 0))
    return pl.pallas_call(
        odin_fused_kernel,
        out_shape=jax.ShapeDtypeStruct((n_pad, cp), jnp.float32),
        grid_spec=pltpu.PrefetchScalarGridSpec(
            num_scalar_prefetch=0,
            grid=(1,),
            in_specs=[full(n_pad, n_pad), full(n_pad, fp),
                      full(fp, hp), full(1, hp), full(1, hp), full(1, hp),
                      full(hp, cp), full(1, cp), full(1, cp)],
            out_specs=full(n_pad, cp),
        ),
        compiler_params=pltpu.CompilerParams(
            dimension_semantics=("arbitrary",),
            vmem_limit_bytes=_vmem_limit_bytes(),
        ),
        cost_estimate=pl.CostEstimate(flops=flops, transcendentals=0,
                                      bytes_accessed=bytes_accessed),
    )(a, x, w1, b1, s1, t1, w2, b2, s2)


# ----------------------------------------------------------------------------
# Large-N per-layer kernel:  out = epilogue( (A_hat @ F) @ W + b )
#   grid = (row_tiles [parallel], k_tiles [arbitrary])
#   acc_ref (VMEM, f32, (tm, fin)) accumulates A_hat @ F across the k axis.
#   If the feature matrix fits, it is VMEM-resident (constant block index) and
#   the k-tile is sliced in-kernel -> read from HBM exactly once.
# ----------------------------------------------------------------------------
def gcn_layer_kernel(a_ref, f_ref, w_ref, b_ref, scale_ref, shift_ref,
                     out_ref, acc_ref, *, apply_relu, feat_resident, tk):
    k = pl.program_id(1)

    @pl.when(k == 0)
    def _():
        acc_ref[...] = jnp.zeros_like(acc_ref)

    if feat_resident:
        off = pl.multiple_of(k * tk, tk)
        f_tile = f_ref[pl.ds(off, tk), :]
    else:
        f_tile = f_ref[...]

    # bf16 x bf16 -> f32 accumulation on the MXU.
    acc_ref[...] += jnp.dot(a_ref[...], f_tile,
                            preferred_element_type=jnp.float32)

    @pl.when(k == pl.num_programs(1) - 1)
    def _():
        agg = acc_ref[...]                       # keep f32 (no bf16 downcast)
        h = jnp.dot(agg, w_ref[...],
                    preferred_element_type=jnp.float32) + b_ref[...]
        if apply_relu:
            h = jnp.maximum(h, 0.0)
        # Folded BatchNorm (layer 1) / folded 1/temperature (layer 2).
        out_ref[...] = (h * scale_ref[...] + shift_ref[...]).astype(out_ref.dtype)


def _gcn_layer(a, feat, w, b, scale, shift, *, out_dtype, apply_relu,
               n_pad, fin, fout):
    tm = tk = LARGE_TILE
    # This path only runs for n > FUSED_MAX_N, so the parallel axis has >= 3
    # row tiles and both v7x TensorCores get work.
    grid = (n_pad // tm, n_pad // tk)

    feat_resident = 2 * n_pad * fin * feat.dtype.itemsize <= RESIDENT_FEAT_BYTES
    if feat_resident:
        feat_spec = pl.BlockSpec((n_pad, fin), lambda i, k: (0, 0))
        feat_bytes = feat.size * feat.dtype.itemsize
    else:
        feat_spec = pl.BlockSpec((tk, fin), lambda i, k: (k, 0))
        feat_bytes = (n_pad // tm) * n_pad * fin * feat.dtype.itemsize

    flops = 2 * n_pad * n_pad * fin + 2 * n_pad * fin * fout
    bytes_accessed = (a.size * a.dtype.itemsize + feat_bytes
                      + w.size * w.dtype.itemsize
                      + n_pad * fout * jnp.dtype(out_dtype).itemsize)

    kernel = functools.partial(gcn_layer_kernel, apply_relu=apply_relu,
                               feat_resident=feat_resident, tk=tk)
    return pl.pallas_call(
        kernel,
        out_shape=jax.ShapeDtypeStruct((n_pad, fout), out_dtype),
        grid_spec=pltpu.PrefetchScalarGridSpec(
            num_scalar_prefetch=0,
            grid=grid,
            in_specs=[
                pl.BlockSpec((tm, tk), lambda i, k: (i, k)),     # A_hat tile
                feat_spec,                                       # feature matrix
                pl.BlockSpec((fin, fout), lambda i, k: (0, 0)),  # W (f32)
                pl.BlockSpec((1, fout), lambda i, k: (0, 0)),    # bias
                pl.BlockSpec((1, fout), lambda i, k: (0, 0)),    # folded scale
                pl.BlockSpec((1, fout), lambda i, k: (0, 0)),    # folded shift
            ],
            out_specs=pl.BlockSpec((tm, fout), lambda i, k: (i, 0)),
            scratch_shapes=[pltpu.VMEM((tm, fin), jnp.float32)],
        ),
        compiler_params=pltpu.CompilerParams(
            dimension_semantics=("parallel", "arbitrary"),
            vmem_limit_bytes=_vmem_limit_bytes(),
        ),
        cost_estimate=pl.CostEstimate(
            flops=flops, transcendentals=0, bytes_accessed=bytes_accessed),
    )(a, feat, w, b, scale, shift)


# ----------------------------------------------------------------------------
# Graph preprocessing (once, outside the forward hot path).
# ----------------------------------------------------------------------------
def build_ahat(edge_index, num_nodes):
    """Dense D^-1/2 (A + I) D^-1/2 from edge_index [2, E] (src, dst).
    Note: duplicated edges in edge_index accumulate (>1 entries) before norm."""
    src, dst = edge_index[0], edge_index[1]
    a = jnp.zeros((num_nodes, num_nodes), jnp.float32)
    a = a.at[dst, src].add(1.0)
    a = a + jnp.eye(num_nodes, dtype=jnp.float32)
    deg = a.sum(axis=1)
    dinv = jnp.where(deg > 0, jax.lax.rsqrt(deg), 0.0)
    return a * dinv[:, None] * dinv[None, :]


# ----------------------------------------------------------------------------
# One-time prepare: padding, bf16 cast of A_hat, BN / temperature folding.
# ----------------------------------------------------------------------------
def prepare_odin(a_hat, params, temperature=1.0):
    n = a_hat.shape[0]
    f_in, hid = params["w1"].shape
    num_classes = params["w2"].shape[1]

    fp = max(_round_up(f_in, 128), 128)
    hp = max(_round_up(hid, 128), 128)
    cp = max(_round_up(num_classes, 128), 128)
    if n <= FUSED_MAX_N:
        n_pad = max(_round_up(n, 128), 128)       # lane-dense small path
    else:
        n_pad = _round_up(n, LARGE_TILE)

    a_p = _pad2(a_hat, n_pad, n_pad).astype(jnp.bfloat16)
    w1_p = _pad2(params["w1"], fp, hp).astype(jnp.float32)   # epilogue matmul f32
    w2_p = _pad2(params["w2"], hp, cp).astype(jnp.float32)
    b1_p = _pad2(params["b1"], 1, hp)
    b2_p = _pad2(params["b2"], 1, cp)

    # Fold BatchNorm1d (eval / running stats) into scale & shift.
    scale1 = params["gamma"] * jax.lax.rsqrt(params["run_var"] + BN_EPS)
    shift1 = params["beta"] - params["run_mean"] * scale1
    s1_p = _pad2(scale1, 1, hp)
    t1_p = _pad2(shift1, 1, hp)

    # Fold 1/temperature into the layer-2 epilogue scale.
    s2_p = jnp.full((1, cp), 1.0 / float(temperature), jnp.float32)
    t2_p = jnp.zeros((1, cp), jnp.float32)

    arrays = dict(a=a_p, w1=w1_p, b1=b1_p, s1=s1_p, t1=t1_p,
                  w2=w2_p, b2=b2_p, s2=s2_p, t2=t2_p)
    meta = dict(n=n, n_pad=n_pad, fp=fp, hp=hp, cp=cp, num_classes=num_classes)
    return arrays, meta


def make_odin_forward(a_hat, params, temperature=1.0):
    arrays, meta = prepare_odin(a_hat, params, temperature)
    n, n_pad = meta["n"], meta["n_pad"]
    fp, hp, cp, nc = meta["fp"], meta["hp"], meta["cp"], meta["num_classes"]
    fused = n_pad <= FUSED_MAX_N

    def fwd(x, a):
        x_p = _pad2(x, n_pad, fp).astype(jnp.bfloat16)
        if fused:
            out = _odin_fused(a["a"], x_p, a["w1"], a["b1"], a["s1"], a["t1"],
                              a["w2"], a["b2"], a["s2"],
                              n_pad=n_pad, fp=fp, hp=hp, cp=cp)
        else:
            h = _gcn_layer(a["a"], x_p, a["w1"], a["b1"], a["s1"], a["t1"],
                           out_dtype=jnp.bfloat16, apply_relu=True,
                           n_pad=n_pad, fin=fp, fout=hp)
            out = _gcn_layer(a["a"], h, a["w2"], a["b2"], a["s2"], a["t2"],
                             out_dtype=jnp.float32, apply_relu=False,
                             n_pad=n_pad, fin=hp, fout=cp)
        return out[:n, :nc]

    jit_fwd = jax.jit(fwd)
    return lambda x: jit_fwd(x, arrays)


# ----------------------------------------------------------------------------
# Plain-JAX reference (mirrors torch eval-mode forward), f32.
# ----------------------------------------------------------------------------
def odin_reference(x, a_hat, params, temperature=1.0):
    h = a_hat @ (x @ params["w1"]) + params["b1"]
    h = jnp.maximum(h, 0.0)
    h = (h - params["run_mean"]) * jax.lax.rsqrt(params["run_var"] + BN_EPS) \
        * params["gamma"] + params["beta"]
    o = a_hat @ (h @ params["w2"]) + params["b2"]
    return o / temperature


def init_params(key, in_feature, hidden_feature, num_classes):
    ks = jax.random.split(key, 6)

    def glorot(k, fan_in, fan_out):
        lim = (6.0 / (fan_in + fan_out)) ** 0.5
        return jax.random.uniform(k, (fan_in, fan_out), jnp.float32, -lim, lim)

    return {
        "w1": glorot(ks[0], in_feature, hidden_feature),
        "b1": jnp.zeros((1, hidden_feature), jnp.float32),
        "w2": glorot(ks[1], hidden_feature, num_classes),
        "b2": jnp.zeros((1, num_classes), jnp.float32),
        "gamma": 1.0 + 0.1 * jax.random.normal(ks[2], (1, hidden_feature), jnp.float32),
        "beta": 0.1 * jax.random.normal(ks[3], (1, hidden_feature), jnp.float32),
        "run_mean": 0.05 * jax.random.normal(ks[4], (1, hidden_feature), jnp.float32),
        "run_var": jax.random.uniform(ks[5], (1, hidden_feature), jnp.float32, 0.5, 1.5),
    }


if __name__ == "__main__":
    # Small shapes: 8 nodes, in_feature=16, hidden=32, classes=4
    N, F_IN, H, C = 8, 16, 32, 4
    DROPOUT = 0.5          # eval mode -> no-op
    TEMPERATURE = 2.0

    key = jax.random.PRNGKey(0)
    k_x, k_p = jax.random.split(key)

    x = jax.random.normal(k_x, (N, F_IN), jnp.float32)

    # Symmetric ring graph: edges (i -> i+1) and (i+1 -> i)
    src = jnp.arange(N, dtype=jnp.int32)
    dst = (src + 1) % N
    edge_index = jnp.stack([jnp.concatenate([src, dst]),
                            jnp.concatenate([dst, src])], axis=0)  # [2, 2N]

    params = init_params(k_p, F_IN, H, C)

    # A_hat is graph-structure-only; prep (pad / cast / BN fold) happens ONCE.
    a_hat = build_ahat(edge_index, N)
    odin_forward = make_odin_forward(a_hat, params, temperature=TEMPERATURE)

    out = odin_forward(x)
    out = jax.block_until_ready(out)

    ref = odin_reference(x, a_hat, params, temperature=TEMPERATURE)
    assert out.shape == (N, C)
    # bf16 A_hat/feature operands (f32 accumulation, f32 weight epilogue).
    assert jnp.allclose(out, ref, atol=5e-2, rtol=5e-2), \
        f"mismatch: max abs err {jnp.max(jnp.abs(out - ref))}"

    print("KERNEL_OK")
</pallas_src>

<mosaic_0001>
module attributes {stable_mosaic.version = 11 : i64} {
  func.func @odin_fused_kernel(%arg0: i32, %arg1: memref<128x128xbf16, #tpu.memory_space<vmem>>, %arg2: memref<128x128xbf16, #tpu.memory_space<vmem>>, %arg3: memref<128x128xf32, #tpu.memory_space<vmem>>, %arg4: memref<1x128xf32, #tpu.memory_space<vmem>>, %arg5: memref<1x128xf32, #tpu.memory_space<vmem>>, %arg6: memref<1x128xf32, #tpu.memory_space<vmem>>, %arg7: memref<128x128xf32, #tpu.memory_space<vmem>>, %arg8: memref<1x128xf32, #tpu.memory_space<vmem>>, %arg9: memref<1x128xf32, #tpu.memory_space<vmem>>, %arg10: memref<128x128xf32, #tpu.memory_space<vmem>>) attributes {dimension_semantics = [#tpu.dimension_semantics<arbitrary>], iteration_bounds = array<i64: 1>, scalar_prefetch = 0 : i64, scratch_operands = 0 : i64, tpu.core_type = #tpu.core_type<tc>, window_params = [{pipeline_mode = #tpu.pipeline_mode<synchronous>, transform_indices = @transform_0, window_bounds = array<i64: 128, 128>}, {pipeline_mode = #tpu.pipeline_mode<synchronous>, transform_indices = @transform_1, window_bounds = array<i64: 128, 128>}, {pipeline_mode = #tpu.pipeline_mode<synchronous>, transform_indices = @transform_2, window_bounds = array<i64: 128, 128>}, {pipeline_mode = #tpu.pipeline_mode<synchronous>, transform_indices = @transform_3, window_bounds = array<i64: 1, 128>}, {pipeline_mode = #tpu.pipeline_mode<synchronous>, transform_indices = @transform_4, window_bounds = array<i64: 1, 128>}, {pipeline_mode = #tpu.pipeline_mode<synchronous>, transform_indices = @transform_5, window_bounds = array<i64: 1, 128>}, {pipeline_mode = #tpu.pipeline_mode<synchronous>, transform_indices = @transform_6, window_bounds = array<i64: 128, 128>}, {pipeline_mode = #tpu.pipeline_mode<synchronous>, transform_indices = @transform_7, window_bounds = array<i64: 1, 128>}, {pipeline_mode = #tpu.pipeline_mode<synchronous>, transform_indices = @transform_8, window_bounds = array<i64: 1, 128>}, {pipeline_mode = #tpu.pipeline_mode<synchronous>, transform_indices = @transform_9, window_bounds = array<i64: 128, 128>}]} {
    %c0 = arith.constant 0 : index
    %c0_0 = arith.constant 0 : index
    %0 = vector.load %arg1[%c0, %c0_0] : memref<128x128xbf16, #tpu.memory_space<vmem>>, vector<128x128xbf16>
    %c0_1 = arith.constant 0 : index
    %c0_2 = arith.constant 0 : index
    %1 = vector.load %arg2[%c0_1, %c0_2] : memref<128x128xbf16, #tpu.memory_space<vmem>>, vector<128x128xbf16>
    %cst = arith.constant dense<0.000000e+00> : vector<128x128xf32>
    %2 = tpu.matmul %0, %1, %cst {dimension_numbers = #tpu.dot_dimension_numbers<[1], [0], [0], [1], [0, 0, 1, 1], [], []>} : vector<128x128xbf16>, vector<128x128xbf16>, vector<128x128xf32> -> vector<128x128xf32>
    %c0_3 = arith.constant 0 : index
    %c0_4 = arith.constant 0 : index
    %3 = vector.load %arg3[%c0_3, %c0_4] : memref<128x128xf32, #tpu.memory_space<vmem>>, vector<128x128xf32>
    %cst_5 = arith.constant dense<0.000000e+00> : vector<128x128xf32>
    %4 = tpu.matmul %2, %3, %cst_5 {dimension_numbers = #tpu.dot_dimension_numbers<[1], [0], [0], [1], [0, 0, 1, 1], [], []>} : vector<128x128xf32>, vector<128x128xf32>, vector<128x128xf32> -> vector<128x128xf32>
    %c0_6 = arith.constant 0 : index
    %c0_7 = arith.constant 0 : index
    %5 = vector.load %arg4[%c0_6, %c0_7] : memref<1x128xf32, #tpu.memory_space<vmem>>, vector<1x128xf32>
    %6 = vector.broadcast %5 : vector<1x128xf32> to vector<128x128xf32>
    %7 = arith.addf %4, %6 : vector<128x128xf32>
    %cst_8 = arith.constant 0.000000e+00 : f32
    %8 = vector.broadcast %cst_8 : f32 to vector<128x128xf32>
    %9 = arith.maximumf %7, %8 : vector<128x128xf32>
    %c0_9 = arith.constant 0 : index
    %c0_10 = arith.constant 0 : index
    %10 = vector.load %arg5[%c0_9, %c0_10] : memref<1x128xf32, #tpu.memory_space<vmem>>, vector<1x128xf32>
    %11 = vector.broadcast %10 : vector<1x128xf32> to vector<128x128xf32>
    %12 = arith.mulf %9, %11 : vector<128x128xf32>
    %c0_11 = arith.constant 0 : index
    %c0_12 = arith.constant 0 : index
    %13 = vector.load %arg6[%c0_11, %c0_12] : memref<1x128xf32, #tpu.memory_space<vmem>>, vector<1x128xf32>
    %14 = vector.broadcast %13 : vector<1x128xf32> to vector<128x128xf32>
    %15 = arith.addf %12, %14 : vector<128x128xf32>
    %16 = arith.truncf %15 : vector<128x128xf32> to vector<128x128xbf16>
    %cst_13 = arith.constant dense<0.000000e+00> : vector<128x128xf32>
    %17 = tpu.matmul %0, %16, %cst_13 {dimension_numbers = #tpu.dot_dimension_numbers<[1], [0], [0], [1], [0, 0, 1, 1], [], []>} : vector<128x128xbf16>, vector<128x128xbf16>, vector<128x128xf32> -> vector<128x128xf32>
    %c0_14 = arith.constant 0 : index
    %c0_15 = arith.constant 0 : index
    %18 = vector.load %arg7[%c0_14, %c0_15] : memref<128x128xf32, #tpu.memory_space<vmem>>, vector<128x128xf32>
    %cst_16 = arith.constant dense<0.000000e+00> : vector<128x128xf32>
    %19 = tpu.matmul %17, %18, %cst_16 {dimension_numbers = #tpu.dot_dimension_numbers<[1], [0], [0], [1], [0, 0, 1, 1], [], []>} : vector<128x128xf32>, vector<128x128xf32>, vector<128x128xf32> -> vector<128x128xf32>
    %c0_17 = arith.constant 0 : index
    %c0_18 = arith.constant 0 : index
    %20 = vector.load %arg8[%c0_17, %c0_18] : memref<1x128xf32, #tpu.memory_space<vmem>>, vector<1x128xf32>
    %21 = vector.broadcast %20 : vector<1x128xf32> to vector<128x128xf32>
    %22 = arith.addf %19, %21 : vector<128x128xf32>
    %c0_19 = arith.constant 0 : index
    %c0_20 = arith.constant 0 : index
    %23 = vector.load %arg9[%c0_19, %c0_20] : memref<1x128xf32, #tpu.memory_space<vmem>>, vector<1x128xf32>
    %24 = vector.broadcast %23 : vector<1x128xf32> to vector<128x128xf32>
    %25 = arith.mulf %22, %24 : vector<128x128xf32>
    %c0_21 = arith.constant 0 : index
    %c0_22 = arith.constant 0 : index
    %26 = vector.load %arg10[%c0_21, %c0_22] : memref<128x128xf32, #tpu.memory_space<vmem>>, vector<128x128xf32>
    tpu.vector_store %arg10[%c0_21, %c0_22], %25 {strides = array<i32>} : memref<128x128xf32, #tpu.memory_space<vmem>>, vector<128x128xf32>,
    return
  }
  func.func @transform_0(%arg0: i32) -> (i32, i32) {
    %c0_i32 = arith.constant 0 : i32
    %c0_i32_0 = arith.constant 0 : i32
    %c0_i32_1 = arith.constant 0 : i32
    return %c0_i32, %c0_i32_0 : i32, i32
  }
  func.func @transform_1(%arg0: i32) -> (i32, i32) {
    %c0_i32 = arith.constant 0 : i32
    %c0_i32_0 = arith.constant 0 : i32
    %c0_i32_1 = arith.constant 0 : i32
    return %c0_i32, %c0_i32_0 : i32, i32
  }
  func.func @transform_2(%arg0: i32) -> (i32, i32) {
    %c0_i32 = arith.constant 0 : i32
    %c0_i32_0 = arith.constant 0 : i32
    %c0_i32_1 = arith.constant 0 : i32
    return %c0_i32, %c0_i32_0 : i32, i32
  }
  func.func @transform_3(%arg0: i32) -> (i32, i32) {
    %c0_i32 = arith.constant 0 : i32
    %c0_i32_0 = arith.constant 0 : i32
    %c0_i32_1 = arith.constant 0 : i32
    return %c0_i32, %c0_i32_0 : i32, i32
  }
  func.func @transform_4(%arg0: i32) -> (i32, i32) {
    %c0_i32 = arith.constant 0 : i32
    %c0_i32_0 = arith.constant 0 : i32
    %c0_i32_1 = arith.constant 0 : i32
    return %c0_i32, %c0_i32_0 : i32, i32
  }
  func.func @transform_5(%arg0: i32) -> (i32, i32) {
    %c0_i32 = arith.constant 0 : i32
    %c0_i32_0 = arith.constant 0 : i32
    %c0_i32_1 = arith.constant 0 : i32
    return %c0_i32, %c0_i32_0 : i32, i32
  }
  func.func @transform_6(%arg0: i32) -> (i32, i32) {
    %c0_i32 = arith.constant 0 : i32
    %c0_i32_0 = arith.constant 0 : i32
    %c0_i32_1 = arith.constant 0 : i32
    return %c0_i32, %c0_i32_0 : i32, i32
  }
  func.func @transform_7(%arg0: i32) -> (i32, i32) {
    %c0_i32 = arith.constant 0 : i32
    %c0_i32_0 = arith.constant 0 : i32
    %c0_i32_1 = arith.constant 0 : i32
    return %c0_i32, %c0_i32_0 : i32, i32
  }
  func.func @transform_8(%arg0: i32) -> (i32, i32) {
    %c0_i32 = arith.constant 0 : i32
    %c0_i32_0 = arith.constant 0 : i32
    %c0_i32_1 = arith.constant 0 : i32
    return %c0_i32, %c0_i32_0 : i32, i32
  }
  func.func @transform_9(%arg0: i32) -> (i32, i32) {
    %c0_i32 = arith.constant 0 : i32
    %c0_i32_0 = arith.constant 0 : i32
    %c0_i32_1 = arith.constant 0 : i32
    return %c0_i32, %c0_i32_0 : i32, i32
  }
}

</mosaic_0001>

<bundles_post_ra>
// kernel: fwd.1
= control target key start
LH: loop header
LB: loop body
LE: loop exit
PB: predicated region body
PF: predicated region fallthrough
CT: control target
= control target key end

     0   :  { %14 = vsyncpa [#allocation3], 0  ;;  %s1534_s0 = inlined_call_operand.vmem [shape: bf16[128,128], index: 0, kind: input, shape index: {}]   ;;  %s1535_s1 = inlined_call_operand.vmem [shape: bf16[128,128], index: 1, kind: input, shape index: {}]   ;;  %s1536_s2 = inlined_call_operand.hbm [shape: f32[128,128], index: 2, kind: input, shape index: {}]   ;;  %s1537_s3 = inlined_call_operand.vmem [shape: f32[1,128], index: 3, kind: input, shape index: {}]   ;;  %s1538_s4 = inlined_call_operand.vmem [shape: f32[1,128], index: 4, kind: input, shape index: {}]   ;;  %s1539_s5 = inlined_call_operand.vmem [shape: f32[1,128], index: 5, kind: input, shape index: {}]   ;;  %s1540_s6 = inlined_call_operand.hbm [shape: f32[128,128], index: 6, kind: input, shape index: {}]   ;;  %s1541_s7 = inlined_call_operand.vmem [shape: f32[1,128], index: 7, kind: input, shape index: {}]   ;;  %s1542_s8 = inlined_call_operand.vmem [shape: f32[1,128], index: 8, kind: input, shape index: {}]   ;;  %s1543_s9 = inlined_call_operand.vmem [shape: f32[128,128], index: 9, kind: output, shape index: {}]  }
   0x1   :  { %15 = vsyncpa [#allocation5], 0  ;;  %s1259_s30 = smov [#allocation2]   ;;  %s1211_s13 = scalar_lea.hbm %s1536_s2, 2048 }
   0x2   :  { %s25_s10 = sshll.u32 %s1259_s30, 4  ;;  %p1212_p0 = scmp.ne.s32.totalorder %s1536_s2, %s1211_s13  ;;  %s26_s10 = int_to_ptr.vmem [resolvable:$true] %s25_s10 }
   0x3   :  { %p1215_p1 = scmp.lt.u32.totalorder %s1211_s13, %s1536_s2 }
   0x5   :  { %p1217_p2 = pnand %p1215_p1, %p1212_p0 }
   0x7   :  { %1220 = shalt.err (!%p1217_p2)
}
   0x8   :  { %s1221_s18 = scalar_lea.vmem %s26_s10, 2048  ;;  %p1226_p4 = scmp.lt.s32.totalorder %s26_s10, %s26_s10 }
   0x9   :  { %p1222_p3 = scmp.ne.s32.totalorder %s26_s10, %s1221_s18  ;;  %p1227_p5 = scmp.lt.s32.totalorder %s1221_s18, %s1221_s18 }
   0xb   :  { %p1228_p6 = por %p1227_p5, %p1226_p4 }
   0xd   :  { %p1229_p7 = pnand %p1228_p6, %p1222_p3 }
   0xf   :  { %1232 = shalt.err (!%p1229_p7)
}
  0x10   :  { %s1260_s19 = smov 128   ;;  %s1261_s20 = smov 8  }
  0x11   :  { %31 = dma.hbm_to_vmem [thread:$0]  %s1536_s2, 2048, %s26_s10, [#allocation3], %s1260_s19, %s1260_s19, %s1261_s20  }
  0x12   :  { %s1262_s23 = smov [#allocation4]   ;;  %s1233_s27 = scalar_lea.hbm %s1540_s6, 2048 }
  0x13   :  { %s43_s24 = sshll.u32 %s1262_s23, 4  ;;  %p1234_p8 = scmp.ne.s32.totalorder %s1540_s6, %s1233_s27  ;;  %s44_s24 = int_to_ptr.vmem [resolvable:$true] %s43_s24 }
  0x14   :  { %p1237_p9 = scmp.lt.u32.totalorder %s1233_s27, %s1540_s6 }
  0x16   :  { %p1239_p10 = pnand %p1237_p9, %p1234_p8 }
  0x18   :  { %1242 = shalt.err (!%p1239_p10)
}
  0x19   :  { %s1243_s12 = scalar_lea.vmem %s44_s24, 2048  ;;  %p1248_p12 = scmp.lt.s32.totalorder %s44_s24, %s44_s24 }
  0x1a   :  { %p1244_p11 = scmp.ne.s32.totalorder %s44_s24, %s1243_s12  ;;  %p1249_p13 = scmp.lt.s32.totalorder %s1243_s12, %s1243_s12 }
  0x1c   :  { %p1250_p0 = por %p1249_p13, %p1248_p12 }
  0x1e   :  { %p1251_p1 = pnand %p1250_p0, %p1244_p11 }
  0x20   :  { %1254 = shalt.err (!%p1251_p1)
}
  0x21   :  { %49 = dma.hbm_to_vmem [thread:$0]  %s1540_s6, 2048, %s44_s24, [#allocation5], %s1260_s19, %s1260_s19, %s1261_s20  }
  0x22   :  { %1255 = dma.done.wait [#allocation3], 2048  }
  0x23   :  { %1256 = vsyncadd [#allocation3], 4294965248 }
  0x24   :  { %1257 = dma.done.wait [#allocation5], 2048  }
  0x25   :  { %1258 = vsyncadd [#allocation5], 4294965248  ;;  %v1195_v0 = vld [vmem:[%s1535_s1] sm:$0xff]   ;;  %v1196_v1 = vld [vmem:[%s1535_s1 + $0x8] sm:$0xff]  }
  0x26   :  { %951 = vmatprep.subr.bf16.mxu0 %v1195_v0  ;;  %v1197_v2 = vld [vmem:[%s1535_s1 + $0x10] sm:$0xff]   ;;  %v1198_v3 = vld [vmem:[%s1535_s1 + $0x18] sm:$0xff]   ;;  %v1352_v4 = vld [vmem:[%s1534_s0] sm:$0xff]  }
  0x27   :  { %952 = vmatpush3.bf16.msra.mxu0 %v1195_v0  ;;  %967 = vmatprep.mubr.bf16.mxu0 %v1352_v4  ;;  %v1199_v5 = vld [vmem:[%s1535_s1 + $0x20] sm:$0xff]   ;;  %v1200_v6 = vld [vmem:[%s1535_s1 + $0x28] sm:$0xff]   ;;  %v288_v9 = vld [vmem:[#allocation2 + $0x10] sm:$0xff] }
  0x28   :  { %953 = vmatprep.subr.bf16.mxu0 %v1196_v1  ;;  %v286_v7 = vld [vmem:[#allocation2] sm:$0xff]  ;;  %v287_v8 = vld [vmem:[#allocation2 + $0x8] sm:$0xff]  ;;  %v289_v11 = vld [vmem:[#allocation2 + $0x18] sm:$0xff] }
  0x29   :  { %v1127_v10 = vpack.c.bf16 %v287_v8, %v286_v7  ;;  %v1131_v12 = vpack.c.bf16 %v289_v11, %v288_v9  ;;  %v290_v13 = vld [vmem:[#allocation2 + $0x20] sm:$0xff]  ;;  %v291_v14 = vld [vmem:[#allocation2 + $0x28] sm:$0xff]  ;;  %v1201_v15 = vld [vmem:[%s1535_s1 + $0x30] sm:$0xff]  }
  0x2a   :  { %v1135_v16 = vpack.c.bf16 %v291_v14, %v290_v13  ;;  %v292_v17 = vld [vmem:[#allocation2 + $0x30] sm:$0xff]  ;;  %v293_v18 = vld [vmem:[#allocation2 + $0x38] sm:$0xff]  ;;  %v294_v21 = vld [vmem:[#allocation2 + $0x40] sm:$0xff] }
  0x2b   :  { %954 = vmatpush3.bf16.msra.mxu0 %v1196_v1  ;;  %1128 = vmatprep.subr.bf16.mxu1 %v1127_v10  ;;  %v1202_v19 = vld [vmem:[%s1535_s1 + $0x38] sm:$0xff]   ;;  %v1139_v20 = vpack.c.bf16 %v293_v18, %v292_v17  ;;  %v295_v22 = vld [vmem:[#allocation2 + $0x48] sm:$0xff]  ;;  %v296_v25 = vld [vmem:[#allocation2 + $0x50] sm:$0xff] }
  0x2c   :  { %955 = vmatprep.subr.bf16.mxu0 %v1197_v2  ;;  %1130 = vmatpush3.bf16.msra.mxu1 %v1127_v10  ;;  %v1143_v23 = vpack.c.bf16 %v295_v22, %v294_v21  ;;  %v1370_v24 = vld [vmem:[%s1534_s0 + $0x8] sm:$0xff]   ;;  %v297_v26 = vld [vmem:[#allocation2 + $0x58] sm:$0xff]  ;;  %v1375_v27 = vld [vmem:[%s1534_s0 + $0x10] sm:$0xff]  }
  0x2d   :  { %1132 = vmatprep.subr.bf16.mxu1 %v1131_v12  ;;  %v1147_v28 = vpack.c.bf16 %v297_v26, %v296_v25  ;;  %v298_v29 = vld [vmem:[#allocation2 + $0x60] sm:$0xff]  ;;  %v299_v30 = vld [vmem:[#allocation2 + $0x68] sm:$0xff]  ;;  %v1382_v32 = vld [vmem:[%s1534_s0 + $0x18] sm:$0xff]  }
  0x2e   :  { %v1151_v31 = vpack.c.bf16 %v299_v30, %v298_v29  ;;  %v1387_v33 = vld [vmem:[%s1534_s0 + $0x20] sm:$0xff]   ;;  %v1394_v34 = vld [vmem:[%s1534_s0 + $0x28] sm:$0xff]   ;;  %v1399_v35 = vld [vmem:[%s1534_s0 + $0x30] sm:$0xff]  }
  0x2f   :  { %956 = vmatpush3.bf16.msra.mxu0 %v1197_v2  ;;  %v1406_v36 = vld [vmem:[%s1534_s0 + $0x38] sm:$0xff]   ;;  %v300_v37 = vld [vmem:[#allocation2 + $0x70] sm:$0xff]  ;;  %v621_v56 = vld [vmem:[#allocation4] sm:$0xff] }
  0x30   :  { %957 = vmatprep.subr.bf16.mxu0 %v1198_v3  ;;  %1134 = vmatpush3.bf16.msra.mxu1 %v1131_v12  ;;  %v301_v38 = vld [vmem:[#allocation2 + $0x78] sm:$0xff]  ;;  %v622_v57 = vld [vmem:[#allocation4 + $0x8] sm:$0xff]  ;;  %v623_v58 = vld [vmem:[#allocation4 + $0x10] sm:$0xff] }
  0x31   :  { %1136 = vmatprep.subr.bf16.mxu1 %v1135_v16  ;;  %v1155_v39 = vpack.c.bf16 %v301_v38, %v300_v37  ;;  %v1159_v59 = vpack.c.bf16 %v622_v57, %v621_v56  ;;  %v624_v60 = vld [vmem:[#allocation4 + $0x18] sm:$0xff]  ;;  %v625_v62 = vld [vmem:[#allocation4 + $0x20] sm:$0xff]  ;;  %v626_v63 = vld [vmem:[#allocation4 + $0x28] sm:$0xff] }
  0x32   :  { %v1163_v61 = vpack.c.bf16 %v624_v60, %v623_v58  ;;  %v1167_v0 = vpack.c.bf16 %v626_v63, %v625_v62  ;;  %v627_v1 = vld [vmem:[#allocation4 + $0x30] sm:$0xff]  ;;  %v628_v2 = vld [vmem:[#allocation4 + $0x38] sm:$0xff]  ;;  %v633_v10 = vld [vmem:[#allocation4 + $0x60] sm:$0xff] }
  0x33   :  { %958 = vmatpush3.bf16.msra.mxu0 %v1198_v3  ;;  %v1171_v3 = vpack.c.bf16 %v628_v2, %v627_v1  ;;  %v631_v7 = vld [vmem:[#allocation4 + $0x50] sm:$0xff]  ;;  %v632_v8 = vld [vmem:[#allocation4 + $0x58] sm:$0xff]  ;;  %v634_v11 = vld [vmem:[#allocation4 + $0x68] sm:$0xff] }
  0x34   :  { %959 = vmatprep.subr.bf16.mxu0 %v1199_v5  ;;  %1138 = vmatpush3.bf16.msra.mxu1 %v1135_v16  ;;  %v1179_v9 = vpack.c.bf16 %v632_v8, %v631_v7  ;;  %v1183_v12 = vpack.c.bf16 %v634_v11, %v633_v10  ;;  %v1413_v13 = vld [vmem:[%s1537_s3] ss:$0 sm:$0xff] }
  0x35   :  { %1140 = vmatprep.subr.bf16.mxu1 %v1139_v20  ;;  %v1419_v17 = vld [vmem:[%s1538_s4] ss:$0 sm:$0xff] }
  0x37   :  { %960 = vmatpush3.bf16.msra.mxu0 %v1199_v5  ;;  %v630_v5 = vld [vmem:[#allocation4 + $0x48] sm:$0xff] }
  0x38   :  { %961 = vmatprep.subr.bf16.mxu0 %v1200_v6  ;;  %1142 = vmatpush3.bf16.msra.mxu1 %v1139_v20  ;;  %v1425_v20 = vld [vmem:[%s1539_s5] ss:$0 sm:$0xff] }
  0x39   :  { %1144 = vmatprep.subr.bf16.mxu1 %v1143_v23 }
  0x3b   :  { %962 = vmatpush3.bf16.msra.mxu0 %v1200_v6 }
  0x3c   :  { %963 = vmatprep.subr.bf16.mxu0 %v1201_v15  ;;  %1146 = vmatpush3.bf16.msra.mxu1 %v1143_v23 }
  0x3d   :  { %1148 = vmatprep.subr.bf16.mxu1 %v1147_v28 }
  0x3f   :  { %964 = vmatpush3.bf16.msra.mxu0 %v1201_v15 }
  0x40   :  { %965 = vmatprep.subr.bf16.mxu0 %v1202_v19  ;;  %1150 = vmatpush3.bf16.msra.mxu1 %v1147_v28 }
  0x41   :  { %1152 = vmatprep.subr.bf16.mxu1 %v1151_v31 }
  0x43   :  { %966 = vmatpush3.bf16.msra.mxu0 %v1202_v19 }
  0x44   :  { %1154 = vmatpush3.bf16.msra.mxu1 %v1151_v31 }
  0x45   :  { %1156 = vmatprep.subr.bf16.mxu1 %v1155_v39 }
  0x46   :  { %968 = vmatmul.mubr.bf16.vlgmr.msra.gmra.mrb[0].mxu0 %v1370_v24 }
  0x47   :  { %971 = vmatprep.mubr.bf16.mxu0 %v1375_v27 }
  0x48   :  { %1158 = vmatpush3.bf16.msra.mxu1 %v1155_v39 }
  0x49   :  { %1160 = vmatprep.subr.bf16.mxu1 %v1159_v59 }
  0x4e   :  { %972 = vmatmul.mubr.bf16.gmra.mrb[4].mxu0 %v1382_v32 }
  0x4f   :  { %975 = vmatprep.mubr.bf16.mxu0 %v1387_v33 }
  0x56   :  { %976 = vmatmul.mubr.bf16.gmra.mrb[8].mxu0 %v1394_v34 }
  0x57   :  { %979 = vmatprep.mubr.bf16.mxu0 %v1399_v35 }
  0x5e   :  { %980 = vmatmul.mubr.bf16.gmra.mrb[12].mxu0 %v1406_v36 }
  0x5f   :  { %1055 = vmatprep.mubr.bf16.mxu0 %v1352_v4  ;;  %v629_v4 = vld [vmem:[#allocation4 + $0x40] sm:$0xff] }
  0x60   :  { %v1175_v6 = vpack.c.bf16 %v630_v5, %v629_v4 }
 0x119   :  { %v969_v40 = vpop.f32.mrb[0].mxu0 }
 0x11a   :  { %v223_v41 = vpop.f32.mrb[1].mxu0 }
 0x11b   :  { %v970_v42 = vpop.f32.mrb[2].mxu0  ;;  %1015 = vmatprep.mubr.f32.mxu1 %v223_v41 }
 0x11c   :  { %v226_v43 = vpop.f32.mrb[3].mxu0 }
 0x11d   :  { %1016 = vmatmul.mubr.f32.vlgmr.msra.gmra.mrb[0].mxu1 %v226_v43 }
 0x11e   :  { %1018 = vmatprep.mubr.f32.mxu1 %v969_v40  ;;  %1162 = vmatpush3.bf16.msra.mxu1 %v1159_v59 }
 0x11f   :  { %1164 = vmatprep.subr.bf16.mxu1 %v1163_v61 }
 0x121   :  { %v973_v44 = vpop.f32.mrb[4].mxu0  ;;  %1019 = vmatmul.mubr.f32.gmra.mrb[2].mxu1 %v970_v42 }
 0x122   :  { %v239_v45 = vpop.f32.mrb[5].mxu0  ;;  %1166 = vmatpush3.bf16.msra.mxu1 %v1163_v61 }
 0x123   :  { %v974_v46 = vpop.f32.mrb[6].mxu0  ;;  %1021 = vmatprep.mubr.f32.mxu1 %v239_v45  ;;  %1168 = vmatprep.subr.bf16.mxu1 %v1167_v0 }
 0x124   :  { %v242_v47 = vpop.f32.mrb[7].mxu0 }
 0x125   :  { %1022 = vmatmul.mubr.f32.gmra.mrb[4].mxu1 %v242_v47 }
 0x126   :  { %1024 = vmatprep.mubr.f32.mxu1 %v973_v44  ;;  %1170 = vmatpush3.bf16.msra.mxu1 %v1167_v0 }
 0x127   :  { %1172 = vmatprep.subr.bf16.mxu1 %v1171_v3 }
 0x129   :  { %v977_v48 = vpop.f32.mrb[8].mxu0  ;;  %1025 = vmatmul.mubr.f32.gmra.mrb[6].mxu1 %v974_v46 }
 0x12a   :  { %v255_v49 = vpop.f32.mrb[9].mxu0  ;;  %1174 = vmatpush3.bf16.msra.mxu1 %v1171_v3 }
 0x12b   :  { %v978_v50 = vpop.f32.mrb[10].mxu0  ;;  %1027 = vmatprep.mubr.f32.mxu1 %v255_v49  ;;  %1176 = vmatprep.subr.bf16.mxu1 %v1175_v6 }
 0x12c   :  { %v258_v51 = vpop.f32.mrb[11].mxu0 }
 0x12d   :  { %1028 = vmatmul.mubr.f32.gmra.mrb[8].mxu1 %v258_v51 }
 0x12e   :  { %1030 = vmatprep.mubr.f32.mxu1 %v977_v48  ;;  %1178 = vmatpush3.bf16.msra.mxu1 %v1175_v6 }
 0x12f   :  { %1180 = vmatprep.subr.bf16.mxu1 %v1179_v9 }
 0x131   :  { %v981_v52 = vpop.f32.mrb[12].mxu0  ;;  %1031 = vmatmul.mubr.f32.gmra.mrb[10].mxu1 %v978_v50 }
 0x132   :  { %v271_v53 = vpop.f32.mrb[13].mxu0  ;;  %1182 = vmatpush3.bf16.msra.mxu1 %v1179_v9 }
 0x133   :  { %v982_v54 = vpop.f32.mrb[14].mxu0  ;;  %1033 = vmatprep.mubr.f32.mxu1 %v271_v53  ;;  %1184 = vmatprep.subr.bf16.mxu1 %v1183_v12 }
 0x134   :  { %v274_v55 = vpop.f32.mrb[15].mxu0 }
 0x135   :  { %1034 = vmatmul.mubr.f32.gmra.mrb[12].mxu1 %v274_v55 }
 0x136   :  { %1036 = vmatprep.mubr.f32.mxu1 %v981_v52  ;;  %1186 = vmatpush3.bf16.msra.mxu1 %v1183_v12 }
 0x139   :  { %1037 = vmatmul.mubr.f32.gmra.mrb[14].mxu1 %v982_v54 }
 0x1f0   :  { %v1017_v14 = vpop.f32.mrb[0].mxu1 }
 0x1f1   :  { %v381_v15 = vadd.f32 %v1017_v14, %v1413_v13  ;;  %v375_v16 = vpop.f32.mrb[1].mxu1 }
 0x1f2   :  { %v376_v18 = vadd.f32 %v1413_v13, %v375_v16 }
 0x1f3   :  { %v455_v19 = vmax.f32 %v381_v15, 0.0 }
 0x1f4   :  { %v454_v21 = vmax.f32 %v376_v18, 0.0  ;;  %v1020_v22 = vpop.f32.mrb[2].mxu1 }
 0x1f5   :  { %v478_v23 = vmul.f32 %v1419_v17, %v455_v19  ;;  %v391_v25 = vadd.f32 %v1020_v22, %v1413_v13  ;;  %v385_v26 = vpop.f32.mrb[3].mxu1 }
 0x1f6   :  { %v477_v28 = vmul.f32 %v1419_v17, %v454_v21  ;;  %v386_v29 = vadd.f32 %v1413_v13, %v385_v26 }
 0x1f7   :  { %v501_v30 = vadd.f32 %v1425_v20, %v478_v23  ;;  %v457_v31 = vmax.f32 %v391_v25, 0.0 }
 0x1f8   :  { %v500_v37 = vadd.f32 %v1425_v20, %v477_v28  ;;  %v456_v38 = vmax.f32 %v386_v29, 0.0  ;;  %v1023_v39 = vpop.f32.mrb[4].mxu1 }
 0x1f9   :  { %v480_v40 = vmul.f32 %v1419_v17, %v457_v31  ;;  %v401_v41 = vadd.f32 %v1023_v39, %v1413_v13  ;;  %v395_v42 = vpop.f32.mrb[5].mxu1 }
 0x1fa   :  { %v479_v43 = vmul.f32 %v1419_v17, %v456_v38  ;;  %v396_v44 = vadd.f32 %v1413_v13, %v395_v42  ;;  %v516_v45 = vpack.c.bf16 %v501_v30, %v500_v37 }
 0x1fb   :  { %v503_v46 = vadd.f32 %v1425_v20, %v480_v40  ;;  %v459_v47 = vmax.f32 %v401_v41, 0.0 }
 0x1fc   :  { %v502_v48 = vadd.f32 %v1425_v20, %v479_v43  ;;  %v458_v49 = vmax.f32 %v396_v44, 0.0  ;;  %v1026_v50 = vpop.f32.mrb[6].mxu1  ;;  %1039 = vmatprep.subr.bf16.mxu0 %v516_v45 }
 0x1fd   :  { %v482_v51 = vmul.f32 %v1419_v17, %v459_v47  ;;  %v411_v52 = vadd.f32 %v1026_v50, %v1413_v13  ;;  %v405_v53 = vpop.f32.mrb[7].mxu1  ;;  %1040 = vmatpush3.bf16.msra.mxu0 %v516_v45 }
 0x1fe   :  { %v481_v54 = vmul.f32 %v1419_v17, %v458_v49  ;;  %v406_v55 = vadd.f32 %v1413_v13, %v405_v53  ;;  %v517_v56 = vpack.c.bf16 %v503_v46, %v502_v48 }
 0x1ff   :  { %v505_v57 = vadd.f32 %v1425_v20, %v482_v51  ;;  %v461_v58 = vmax.f32 %v411_v52, 0.0 }
 0x200   :  { %v504_v59 = vadd.f32 %v1425_v20, %v481_v54  ;;  %v460_v60 = vmax.f32 %v406_v55, 0.0  ;;  %v1029_v61 = vpop.f32.mrb[8].mxu1  ;;  %1041 = vmatprep.subr.bf16.mxu0 %v517_v56 }
 0x201   :  { %v484_v62 = vmul.f32 %v1419_v17, %v461_v58  ;;  %v421_v63 = vadd.f32 %v1029_v61, %v1413_v13  ;;  %v415_v0 = vpop.f32.mrb[9].mxu1  ;;  %1042 = vmatpush3.bf16.msra.mxu0 %v517_v56 }
 0x202   :  { %v483_v1 = vmul.f32 %v1419_v17, %v460_v60  ;;  %v416_v2 = vadd.f32 %v1413_v13, %v415_v0  ;;  %v518_v3 = vpack.c.bf16 %v505_v57, %v504_v59 }
 0x203   :  { %v507_v4 = vadd.f32 %v1425_v20, %v484_v62  ;;  %v463_v5 = vmax.f32 %v421_v63, 0.0 }
 0x204   :  { %v506_v6 = vadd.f32 %v1425_v20, %v483_v1  ;;  %v462_v7 = vmax.f32 %v416_v2, 0.0  ;;  %v1032_v8 = vpop.f32.mrb[10].mxu1  ;;  %1043 = vmatprep.subr.bf16.mxu0 %v518_v3  ;;  %v853_v2 = vld [vmem:[%s1541_s7] ss:$0 sm:$0xff] }
 0x205   :  { %v486_v9 = vmul.f32 %v1419_v17, %v463_v5  ;;  %v431_v10 = vadd.f32 %v1032_v8, %v1413_v13  ;;  %v425_v11 = vpop.f32.mrb[11].mxu1  ;;  %1044 = vmatpush3.bf16.msra.mxu0 %v518_v3 }
 0x206   :  { %v485_v12 = vmul.f32 %v1419_v17, %v462_v7  ;;  %v426_v14 = vadd.f32 %v1413_v13, %v425_v11  ;;  %v519_v15 = vpack.c.bf16 %v507_v4, %v506_v6  ;;  %v854_v4 = vld [vmem:[%s1542_s8] ss:$0 sm:$0xff] }
 0x207   :  { %v509_v16 = vadd.f32 %v1425_v20, %v486_v9  ;;  %v465_v18 = vmax.f32 %v431_v10, 0.0 }
 0x208   :  { %v508_v19 = vadd.f32 %v1425_v20, %v485_v12  ;;  %v464_v21 = vmax.f32 %v426_v14, 0.0  ;;  %v1035_v22 = vpop.f32.mrb[12].mxu1  ;;  %1045 = vmatprep.subr.bf16.mxu0 %v519_v15 }
 0x209   :  { %v488_v23 = vmul.f32 %v1419_v17, %v465_v18  ;;  %v441_v25 = vadd.f32 %v1035_v22, %v1413_v13  ;;  %v435_v26 = vpop.f32.mrb[13].mxu1  ;;  %1046 = vmatpush3.bf16.msra.mxu0 %v519_v15 }
 0x20a   :  { %v487_v28 = vmul.f32 %v1419_v17, %v464_v21  ;;  %v436_v29 = vadd.f32 %v1413_v13, %v435_v26  ;;  %v520_v30 = vpack.c.bf16 %v509_v16, %v508_v19 }
 0x20b   :  { %v511_v31 = vadd.f32 %v1425_v20, %v488_v23  ;;  %v467_v37 = vmax.f32 %v441_v25, 0.0 }
 0x20c   :  { %v510_v38 = vadd.f32 %v1425_v20, %v487_v28  ;;  %v466_v39 = vmax.f32 %v436_v29, 0.0  ;;  %v1038_v40 = vpop.f32.mrb[14].mxu1  ;;  %1047 = vmatprep.subr.bf16.mxu0 %v520_v30 }
 0x20d   :  { %v490_v41 = vmul.f32 %v1419_v17, %v467_v37  ;;  %v451_v42 = vadd.f32 %v1038_v40, %v1413_v13  ;;  %v445_v43 = vpop.f32.mrb[15].mxu1  ;;  %1048 = vmatpush3.bf16.msra.mxu0 %v520_v30 }
 0x20e   :  { %v489_v44 = vmul.f32 %v1419_v17, %v466_v39  ;;  %v446_v45 = vadd.f32 %v1413_v13, %v445_v43  ;;  %v521_v46 = vpack.c.bf16 %v511_v31, %v510_v38 }
 0x20f   :  { %v513_v47 = vadd.f32 %v1425_v20, %v490_v41  ;;  %v469_v48 = vmax.f32 %v451_v42, 0.0 }
 0x210   :  { %v512_v49 = vadd.f32 %v1425_v20, %v489_v44  ;;  %v468_v50 = vmax.f32 %v446_v45, 0.0  ;;  %1049 = vmatprep.subr.bf16.mxu0 %v521_v46 }
 0x211   :  { %v492_v51 = vmul.f32 %v1419_v17, %v469_v48  ;;  %1050 = vmatpush3.bf16.msra.mxu0 %v521_v46 }
 0x212   :  { %v491_v52 = vmul.f32 %v1419_v17, %v468_v50  ;;  %v522_v53 = vpack.c.bf16 %v513_v47, %v512_v49  ;;  %v635_v17 = vld [vmem:[#allocation4 + $0x70] sm:$0xff] }
 0x213   :  { %v515_v54 = vadd.f32 %v1425_v20, %v492_v51 }
 0x214   :  { %v514_v55 = vadd.f32 %v1425_v20, %v491_v52  ;;  %1051 = vmatprep.subr.bf16.mxu0 %v522_v53  ;;  %v636_v20 = vld [vmem:[#allocation4 + $0x78] sm:$0xff] }
 0x215   :  { %1052 = vmatpush3.bf16.msra.mxu0 %v522_v53  ;;  %v1187_v56 = vpack.c.bf16 %v636_v20, %v635_v17 }
 0x216   :  { %v523_v13 = vpack.c.bf16 %v515_v54, %v514_v55 }
 0x217   :  { %1188 = vmatprep.subr.bf16.mxu1 %v1187_v56 }
 0x218   :  { %1053 = vmatprep.subr.bf16.mxu0 %v523_v13  ;;  %1190 = vmatpush3.bf16.msra.mxu1 %v1187_v56 }
 0x219   :  { %1054 = vmatpush3.bf16.msra.mxu0 %v523_v13 }
 0x21c   :  { %1056 = vmatmul.mubr.bf16.vlgmr.msra.gmra.mrb[16].mxu0 %v1370_v24 }
 0x21d   :  { %1059 = vmatprep.mubr.bf16.mxu0 %v1375_v27 }
 0x224   :  { %1060 = vmatmul.mubr.bf16.gmra.mrb[20].mxu0 %v1382_v32 }
 0x225   :  { %1063 = vmatprep.mubr.bf16.mxu0 %v1387_v33 }
 0x22c   :  { %1064 = vmatmul.mubr.bf16.gmra.mrb[24].mxu0 %v1394_v34 }
 0x22d   :  { %1067 = vmatprep.mubr.bf16.mxu0 %v1399_v35 }
 0x234   :  { %1068 = vmatmul.mubr.bf16.gmra.mrb[28].mxu0 %v1406_v36 }
 0x2ef   :  { %v1057_v57 = vpop.f32.mrb[16].mxu0 }
 0x2f0   :  { %v558_v58 = vpop.f32.mrb[17].mxu0 }
 0x2f1   :  { %v1058_v24 = vpop.f32.mrb[18].mxu0  ;;  %1103 = vmatprep.mubr.f32.mxu1 %v558_v58 }
 0x2f2   :  { %v561_v27 = vpop.f32.mrb[19].mxu0 }
 0x2f3   :  { %1104 = vmatmul.mubr.f32.vlgmr.msra.gmra.mrb[16].mxu1 %v561_v27 }
 0x2f4   :  { %1106 = vmatprep.mubr.f32.mxu1 %v1057_v57 }
 0x2f7   :  { %v1061_v32 = vpop.f32.mrb[20].mxu0  ;;  %1107 = vmatmul.mubr.f32.gmra.mrb[18].mxu1 %v1058_v24 }
 0x2f8   :  { %v574_v33 = vpop.f32.mrb[21].mxu0 }
 0x2f9   :  { %v1062_v34 = vpop.f32.mrb[22].mxu0  ;;  %1109 = vmatprep.mubr.f32.mxu1 %v574_v33 }
 0x2fa   :  { %v577_v35 = vpop.f32.mrb[23].mxu0 }
 0x2fb   :  { %1110 = vmatmul.mubr.f32.gmra.mrb[20].mxu1 %v577_v35 }
 0x2fc   :  { %1112 = vmatprep.mubr.f32.mxu1 %v1061_v32 }
 0x2ff   :  { %v1065_v36 = vpop.f32.mrb[24].mxu0  ;;  %1113 = vmatmul.mubr.f32.gmra.mrb[22].mxu1 %v1062_v34 }
 0x300   :  { %v590_v59 = vpop.f32.mrb[25].mxu0 }
 0x301   :  { %v1066_v60 = vpop.f32.mrb[26].mxu0  ;;  %1115 = vmatprep.mubr.f32.mxu1 %v590_v59 }
 0x302   :  { %v593_v61 = vpop.f32.mrb[27].mxu0 }
 0x303   :  { %1116 = vmatmul.mubr.f32.gmra.mrb[24].mxu1 %v593_v61 }
 0x304   :  { %1118 = vmatprep.mubr.f32.mxu1 %v1065_v36 }
 0x307   :  { %v1069_v62 = vpop.f32.mrb[28].mxu0  ;;  %1119 = vmatmul.mubr.f32.gmra.mrb[26].mxu1 %v1066_v60 }
 0x308   :  { %v606_v63 = vpop.f32.mrb[29].mxu0 }
 0x309   :  { %v1070_v0 = vpop.f32.mrb[30].mxu0  ;;  %1121 = vmatprep.mubr.f32.mxu1 %v606_v63 }
 0x30a   :  { %v609_v1 = vpop.f32.mrb[31].mxu0 }
 0x30b   :  { %1122 = vmatmul.mubr.f32.gmra.mrb[28].mxu1 %v609_v1 }
 0x30c   :  { %1124 = vmatprep.mubr.f32.mxu1 %v1069_v62 }
 0x30f   :  { %1125 = vmatmul.mubr.f32.gmra.mrb[30].mxu1 %v1070_v0 }
 0x3c6   :  { %v1105_v3 = vpop.f32.mrb[16].mxu1 }
 0x3c7   :  { %v716_v5 = vadd.f32 %v1105_v3, %v853_v2  ;;  %v710_v6 = vpop.f32.mrb[17].mxu1 }
 0x3c8   :  { %v711_v7 = vadd.f32 %v853_v2, %v710_v6 }
 0x3c9   :  { %v797_v8 = vmul.f32 %v854_v4, %v716_v5 }
 0x3ca   :  { %v796_v9 = vmul.f32 %v854_v4, %v711_v7  ;;  %v1108_v10 = vpop.f32.mrb[18].mxu1 }
 0x3cb   :  { %813 = vst [vmem:[%s1543_s9 + $0x8] sm:$0xff] %v797_v8  ;;  %v726_v11 = vadd.f32 %v1108_v10, %v853_v2  ;;  %v720_v12 = vpop.f32.mrb[19].mxu1 }
 0x3cc   :  { %812 = vst [vmem:[%s1543_s9] sm:$0xff] %v796_v9  ;;  %v721_v14 = vadd.f32 %v853_v2, %v720_v12 }
 0x3cd   :  { %v799_v15 = vmul.f32 %v854_v4, %v726_v11 }
 0x3ce   :  { %v798_v16 = vmul.f32 %v854_v4, %v721_v14  ;;  %v1111_v18 = vpop.f32.mrb[20].mxu1 }
 0x3cf   :  { %815 = vst [vmem:[%s1543_s9 + $0x18] sm:$0xff] %v799_v15  ;;  %v736_v19 = vadd.f32 %v1111_v18, %v853_v2  ;;  %v730_v21 = vpop.f32.mrb[21].mxu1 }
 0x3d0   :  { %814 = vst [vmem:[%s1543_s9 + $0x10] sm:$0xff] %v798_v16  ;;  %v731_v22 = vadd.f32 %v853_v2, %v730_v21 }
 0x3d1   :  { %v801_v23 = vmul.f32 %v854_v4, %v736_v19 }
 0x3d2   :  { %v800_v25 = vmul.f32 %v854_v4, %v731_v22  ;;  %v1114_v26 = vpop.f32.mrb[22].mxu1 }
 0x3d3   :  { %817 = vst [vmem:[%s1543_s9 + $0x28] sm:$0xff] %v801_v23  ;;  %v746_v28 = vadd.f32 %v1114_v26, %v853_v2  ;;  %v740_v29 = vpop.f32.mrb[23].mxu1 }
 0x3d4   :  { %816 = vst [vmem:[%s1543_s9 + $0x20] sm:$0xff] %v800_v25  ;;  %v741_v30 = vadd.f32 %v853_v2, %v740_v29 }
 0x3d5   :  { %v803_v31 = vmul.f32 %v854_v4, %v746_v28 }
 0x3d6   :  { %v802_v37 = vmul.f32 %v854_v4, %v741_v30  ;;  %v1117_v38 = vpop.f32.mrb[24].mxu1 }
 0x3d7   :  { %819 = vst [vmem:[%s1543_s9 + $0x38] sm:$0xff] %v803_v31  ;;  %v756_v39 = vadd.f32 %v1117_v38, %v853_v2  ;;  %v750_v40 = vpop.f32.mrb[25].mxu1 }
 0x3d8   :  { %818 = vst [vmem:[%s1543_s9 + $0x30] sm:$0xff] %v802_v37  ;;  %v751_v41 = vadd.f32 %v853_v2, %v750_v40 }
 0x3d9   :  { %v805_v42 = vmul.f32 %v854_v4, %v756_v39 }
 0x3da   :  { %v804_v43 = vmul.f32 %v854_v4, %v751_v41  ;;  %v1120_v44 = vpop.f32.mrb[26].mxu1 }
 0x3db   :  { %821 = vst [vmem:[%s1543_s9 + $0x48] sm:$0xff] %v805_v42  ;;  %v766_v45 = vadd.f32 %v1120_v44, %v853_v2  ;;  %v760_v46 = vpop.f32.mrb[27].mxu1 }
 0x3dc   :  { %820 = vst [vmem:[%s1543_s9 + $0x40] sm:$0xff] %v804_v43  ;;  %v761_v47 = vadd.f32 %v853_v2, %v760_v46 }
 0x3dd   :  { %v807_v48 = vmul.f32 %v854_v4, %v766_v45 }
 0x3de   :  { %v806_v49 = vmul.f32 %v854_v4, %v761_v47  ;;  %v1123_v50 = vpop.f32.mrb[28].mxu1 }
 0x3df   :  { %823 = vst [vmem:[%s1543_s9 + $0x58] sm:$0xff] %v807_v48  ;;  %v776_v51 = vadd.f32 %v1123_v50, %v853_v2  ;;  %v770_v52 = vpop.f32.mrb[29].mxu1 }
 0x3e0   :  { %822 = vst [vmem:[%s1543_s9 + $0x50] sm:$0xff] %v806_v49  ;;  %v771_v53 = vadd.f32 %v853_v2, %v770_v52 }
 0x3e1   :  { %v809_v54 = vmul.f32 %v854_v4, %v776_v51 }
 0x3e2   :  { %v808_v55 = vmul.f32 %v854_v4, %v771_v53  ;;  %v1126_v13 = vpop.f32.mrb[30].mxu1 }
 0x3e3   :  { %825 = vst [vmem:[%s1543_s9 + $0x68] sm:$0xff] %v809_v54  ;;  %v786_v17 = vadd.f32 %v1126_v13, %v853_v2  ;;  %v780_v20 = vpop.f32.mrb[31].mxu1 }
 0x3e4   :  { %824 = vst [vmem:[%s1543_s9 + $0x60] sm:$0xff] %v808_v55  ;;  %v781_v56 = vadd.f32 %v853_v2, %v780_v20 }
 0x3e5   :  { %v811_v57 = vmul.f32 %v854_v4, %v786_v17 }
 0x3e6   :  { %v810_v58 = vmul.f32 %v854_v4, %v781_v56 }
 0x3e7   :  { %827 = vst [vmem:[%s1543_s9 + $0x78] sm:$0xff] %v811_v57 }
 0x3e8   :  { %826 = vst [vmem:[%s1543_s9 + $0x70] sm:$0xff] %v810_v58 }
 0x3e9   :  { %832 = vsyncpa [#allocation3], 1 }
 0x3ea   :  { %833 = vsyncpa [#allocation5], 1 }

</bundles_post_ra>
